<compile_context>
chip_gen: v5e
topology: v5e:2x2
jax: 0.10.0
libtpu: 0.0.40
codegen_flags: <defaults>
</compile_context>

<pallas_src>
import math

import numpy as np
import jax
import jax.numpy as jnp
from jax import lax
from jax.experimental import pallas as pl
from jax.experimental.pallas import tpu as pltpu


def _bcnet_kernel(v_ref, q_ref, wv_ref, bv_ref, wq_ref, bq_ref,
                  hmat_ref, hbias_ref, out_ref, vf_scr, qg_scr):
    """One grid step == TB batch elements (activations pre-flattened).

    v_ref    : (TB*Nv,  v_dim)   VMEM
    q_ref    : (TB*Nqp, q_dim)   VMEM   (Nqp = Nq padded so G*Nqp % 128 == 0)
    wv_ref   : (v_dim, H)        VMEM   matmul dtype (H = h_dim*k, weight-norm folded)
    bv_ref   : (1, H)            VMEM   f32
    wq_ref   : (q_dim, H)        VMEM   matmul dtype
    bq_ref   : (1, H)            VMEM   f32
    hmat_ref : (G, H)            VMEM   f32
    hbias_ref: (1, G*Nqp)        VMEM   f32 (per-glimpse bias repeated along Nqp)
    out_ref  : (TB*Nv, G*Nqp)    VMEM   f32
    vf_scr   : (TB*Nv, H)        VMEM   matmul-dtype scratch
    qg_scr   : (TB, G*Nqp, H)    VMEM   matmul-dtype scratch
    """
    G, H = hmat_ref.shape
    TB, GN, _ = qg_scr.shape
    Nv = v_ref.shape[0] // TB
    Nqp = q_ref.shape[0] // TB
    mm_dtype = wv_ref.dtype

    # FCNet (weight-normed Linear + ReLU): MXU in mm_dtype, f32 accumulation,
    # bias add + ReLU in f32 (legal on v5e's f32-only VPU).
    vf = jnp.maximum(
        jnp.dot(v_ref[...].astype(mm_dtype), wv_ref[...],
                preferred_element_type=jnp.float32) + bv_ref[...], 0.0)   # (TB*Nv, H)
    qf = jnp.maximum(
        jnp.dot(q_ref[...].astype(mm_dtype), wq_ref[...],
                preferred_element_type=jnp.float32) + bq_ref[...], 0.0)   # (TB*Nqp, H)

    # Hoisted (single op each, not re-emitted per batch element):
    #   vf cast once; glimpse scaling of qf done for the whole block:
    #   qg[b, g*Nqp + j, h] = h_mat[g, h] * qf[b, j, h]
    vf_scr[...] = vf.astype(mm_dtype)
    qg = hmat_ref[...][None, :, None, :] * qf.reshape(TB, Nqp, H)[:, None, :, :]
    qg_scr[...] = qg.reshape(TB, GN, H).astype(mm_dtype)

    hbias = hbias_ref[...]                                                # (1, GN) f32

    # Bilinear part: glimpse folded into the matmul N dim; one MXU call per batch
    # element. fori_loop (not a Python for) bounds live ranges to one (Nv, GN) tile.
    def body(b, carry):
        r = b * Nv
        if Nv % 8 == 0:
            r = pl.multiple_of(r, 8)
        logits = lax.dot_general(
            vf_scr[pl.ds(r, Nv), :], qg_scr[b],
            dimension_numbers=(((1,), (1,)), ((), ())),
            preferred_element_type=jnp.float32)                           # (Nv, GN)
        out_ref[pl.ds(r, Nv), :] = (logits + hbias).astype(out_ref.dtype)
        return carry

    lax.fori_loop(0, TB, body, 0, unroll=min(TB, 2))


def _round_up(x, m):
    return -(-x // m) * m


def _pad_nq(Nq, G):
    """Smallest Nq_pad >= Nq with Nq_pad % 8 == 0 and (if not too costly)
    G * Nq_pad % 128 == 0 (lane-dense output slab + full MXU N tiles)."""
    nq8 = _round_up(Nq, 8)
    lane_step = math.lcm(8, 128 // math.gcd(G, 128))
    nq_lane = _round_up(Nq, lane_step)
    return nq_lane if nq_lane <= 4 * nq8 else nq8


def _pick_block_b(B, Nv, target_rows=512):
    """Largest divisor TB of B with TB*Nv <= target_rows, preferring sublane-aligned
    blocks (TB*Nv % 8 == 0) and an even number of grid steps (v7x 2-core megacore)."""
    divisors = [d for d in range(1, B + 1) if B % d == 0]
    aligned = [d for d in divisors if (d * Nv) % 8 == 0 or d == B]
    fitting = [d for d in aligned if d * Nv <= target_rows]
    if not fitting:
        return min(aligned)

    def score(d):
        n_steps = B // d
        return (n_steps % 2 == 0 or n_steps == 1, d)

    return max(fitting, key=score)


_DEFAULTISH_SCOPED_VMEM = 28 * 1024 * 1024
_SINGLE_BUFFER_WEIGHT_BYTES = 4 * 1024 * 1024


def _maybe_vmem_limit(est_bytes):
    """Raise the scoped VMEM limit only when the estimate exceeds the default."""
    if est_bytes <= _DEFAULTISH_SCOPED_VMEM:
        return None
    try:
        cap = pltpu.get_tpu_info().vmem_capacity_bytes
    except Exception:
        cap = 64 * 1024 * 1024          # conservative (v7x physical per-TC VMEM)
    return int(min(cap * 0.85, est_bytes * 1.25))


def _const_spec(shape, single_buffer):
    """BlockSpec for a grid-invariant (resident) operand; single-buffer when large."""
    index_map = lambda b: (0,) * len(shape)
    if single_buffer:
        try:
            return pl.BlockSpec(shape, index_map, pipeline_mode=pl.Buffered(1))
        except TypeError:               # older BlockSpec without pipeline_mode kwarg
            pass
    return pl.BlockSpec(shape, index_map)


def bcnet_forward(v, q, params, *, matmul_dtype=jnp.bfloat16, block_b=None):
    """Pallas-backed BCNet.forward, `glimpse <= self.c` branch (inference / eval).

    bf16 MXU operands with f32 accumulation by default; pass
    matmul_dtype=jnp.float32 when bit-faithful numerics vs the torch module matter.
    """
    B, Nv, v_dim = v.shape
    Bq, Nq, q_dim = q.shape
    assert B == Bq

    # Weights cast once in the wrapper (halves weight VMEM / DMA in bf16 mode).
    wv = params["wv"].astype(matmul_dtype)               # (v_dim, H)
    wq = params["wq"].astype(matmul_dtype)               # (q_dim, H)
    bv = params["bv"].astype(jnp.float32)                # (1, H)
    bq = params["bq"].astype(jnp.float32)                # (1, H)
    h_mat = params["h_mat"].astype(jnp.float32)          # (G, H)
    h_bias = params["h_bias"].astype(jnp.float32)        # (G, 1)
    H = wv.shape[1]
    G = h_mat.shape[0]

    # Pad Nq so the output lane dim / bilinear MXU N dim (G*Nq_pad) is 128-dense
    # (unmasked stores, no reshape relayout). Padded columns produce garbage logits
    # (zero q rows still pass bias+ReLU) and are stripped after the final transpose.
    Nqp = _pad_nq(Nq, G)
    if Nqp != Nq:
        q = jnp.pad(q, ((0, 0), (0, Nqp - Nq), (0, 0)))
    GN = G * Nqp

    TB = block_b if block_b is not None else _pick_block_b(B, Nv)
    assert B % TB == 0
    n_steps = B // TB

    # Wrapper-side flatten is metadata-only; avoids in-kernel (TB, Nv) merges that
    # would relayout the activation block whenever Nv % 8 != 0.
    v2 = v.reshape(B * Nv, v_dim)
    q2 = q.reshape(B * Nqp, q_dim)

    # Per-glimpse bias pre-expanded to a single (1, GN) lane row.
    hbias_row = jnp.repeat(h_bias.reshape(G), Nqp).reshape(1, GN)

    mm_size = np.dtype(matmul_dtype).itemsize
    in_size = np.dtype(v.dtype).itemsize
    weight_bytes = (v_dim + q_dim) * H * mm_size
    single_buffer = weight_bytes > _SINGLE_BUFFER_WEIGHT_BYTES
    weight_buf = 1 if single_buffer else 2

    est_vmem = (
        2 * (TB * Nv * v_dim + TB * Nqp * q_dim) * in_size          # pipelined inputs
        + weight_buf * (weight_bytes + (2 * H + G * H + GN) * 4)    # resident consts
        + 2 * TB * Nv * GN * 4                                      # pipelined output
        + (TB * Nv + TB * GN) * H * mm_size                         # vf/qg scratch
        + (TB * Nv + TB * Nqp + TB * GN) * H * 4)                   # f32 intermediates
    cp_kwargs = dict(dimension_semantics=("parallel",))
    vmem_limit = _maybe_vmem_limit(est_vmem)
    if vmem_limit is not None:
        cp_kwargs["vmem_limit_bytes"] = vmem_limit

    flops = 2 * B * H * (Nv * v_dim + Nqp * q_dim + Nv * GN)
    bytes_accessed = int(
        v2.size * in_size + q2.size * np.dtype(q.dtype).itemsize
        + weight_bytes + (2 * H + G * H + GN) * 4
        + B * Nv * GN * 4)

    out2 = pl.pallas_call(
        _bcnet_kernel,
        out_shape=jax.ShapeDtypeStruct((B * Nv, GN), jnp.float32),
        grid_spec=pltpu.PrefetchScalarGridSpec(
            num_scalar_prefetch=0,
            grid=(n_steps,),
            in_specs=[
                pl.BlockSpec((TB * Nv, v_dim), lambda b: (b, 0)),
                pl.BlockSpec((TB * Nqp, q_dim), lambda b: (b, 0)),
                _const_spec((v_dim, H), single_buffer),
                _const_spec((1, H), single_buffer),
                _const_spec((q_dim, H), single_buffer),
                _const_spec((1, H), single_buffer),
                _const_spec((G, H), single_buffer),
                _const_spec((1, GN), single_buffer),
            ],
            out_specs=pl.BlockSpec((TB * Nv, GN), lambda b: (b, 0)),
            scratch_shapes=[
                pltpu.VMEM((TB * Nv, H), matmul_dtype),
                pltpu.VMEM((TB, GN, H), matmul_dtype),
            ],
        ),
        compiler_params=pltpu.CompilerParams(**cp_kwargs),
        cost_estimate=pl.CostEstimate(
            flops=flops, transcendentals=0, bytes_accessed=bytes_accessed),
    )(v2, q2, wv, bv, wq, bq, h_mat, hbias_row)

    # (B*Nv, GN) lane-dense slab -> (B, G, Nv, Nq): layout plumbing + pad strip.
    out = out2.reshape(B, Nv, G, Nqp).transpose(0, 2, 1, 3)
    return out[..., :Nq]


def _weight_norm_effective(w, g):
    """PyTorch weight_norm(dim=None): W_eff = g * W / ||W||_F (g is a scalar)."""
    return (g / jnp.linalg.norm(w)) * w


def init_bcnet_params(key, v_dim, q_dim, h_dim, glimpse, k=3):
    """Deterministic parameter construction (shapes per BCNet.__init__)."""
    H = h_dim * k
    ks = jax.random.split(key, 8)

    # Linear layers (PyTorch stores (out, in); we fold the transpose here).
    wv_raw = jax.random.uniform(ks[0], (H, v_dim), jnp.float32,
                                -1.0 / jnp.sqrt(v_dim), 1.0 / jnp.sqrt(v_dim))
    bv = jax.random.uniform(ks[1], (1, H), jnp.float32,
                            -1.0 / jnp.sqrt(v_dim), 1.0 / jnp.sqrt(v_dim))
    wq_raw = jax.random.uniform(ks[2], (H, q_dim), jnp.float32,
                                -1.0 / jnp.sqrt(q_dim), 1.0 / jnp.sqrt(q_dim))
    bq = jax.random.uniform(ks[3], (1, H), jnp.float32,
                            -1.0 / jnp.sqrt(q_dim), 1.0 / jnp.sqrt(q_dim))
    gv = 1.0 + 0.1 * jax.random.normal(ks[4], ())
    gq = 1.0 + 0.1 * jax.random.normal(ks[5], ())

    h_mat = jax.random.normal(ks[6], (glimpse, H), jnp.float32)   # (1,G,1,H) in torch
    h_bias = jax.random.normal(ks[7], (glimpse, 1), jnp.float32)  # (1,G,1,1) in torch

    return {
        "wv": _weight_norm_effective(wv_raw, gv).T,   # (v_dim, H)
        "bv": bv,
        "wq": _weight_norm_effective(wq_raw, gq).T,   # (q_dim, H)
        "bq": bq,
        "h_mat": h_mat,
        "h_bias": h_bias,
    }


def bcnet_reference(v, q, params):
    """Plain-JAX reference mirroring the PyTorch forward (glimpse <= c branch)."""
    vf = jnp.maximum(v.astype(jnp.float32) @ params["wv"] + params["bv"], 0.0)  # (B,Nv,H)
    qf = jnp.maximum(q.astype(jnp.float32) @ params["wq"] + params["bq"], 0.0)  # (B,Nq,H)
    h_ = vf[:, None, :, :] * params["h_mat"][None, :, None, :]                   # (B,G,Nv,H)
    logits = jnp.einsum("bgvh,bqh->bgvq", h_, qf)
    return logits + params["h_bias"][None, :, :, None]


if __name__ == "__main__":
    # Small shapes consistent with the module: v_dim=q_dim=16, h_dim=32, k=3, glimpse=4.
    B, Nv, Nq = 2, 8, 8
    v_dim, q_dim, h_dim, k, glimpse = 16, 16, 32, 3, 4

    key = jax.random.PRNGKey(0)
    kv, kq, kp = jax.random.split(key, 3)
    v = jax.random.normal(kv, (B, Nv, v_dim), jnp.float32)
    q = jax.random.normal(kq, (B, Nq, q_dim), jnp.float32)
    params = init_bcnet_params(kp, v_dim, q_dim, h_dim, glimpse, k)

    ref = bcnet_reference(v, q, params)

    # f32 MXU path: tight check against the plain-JAX reference.
    out_f32 = jax.block_until_ready(
        bcnet_forward(v, q, params, matmul_dtype=jnp.float32))
    assert out_f32.shape == (B, glimpse, Nv, Nq), out_f32.shape
    assert jnp.allclose(out_f32, ref, atol=1e-4, rtol=1e-4), \
        float(jnp.max(jnp.abs(out_f32 - ref)))

    # Multi-grid-step path (TB=1 -> two grid steps) also exercised.
    out_tb1 = jax.block_until_ready(
        bcnet_forward(v, q, params, matmul_dtype=jnp.float32, block_b=1))
    assert jnp.allclose(out_tb1, ref, atol=1e-4, rtol=1e-4), \
        float(jnp.max(jnp.abs(out_tb1 - ref)))

    # Default bf16 MXU path (v5e/v6e/v7x fast path): same semantics, looser tolerance.
    out_bf16 = jax.block_until_ready(bcnet_forward(v, q, params))
    assert out_bf16.shape == (B, glimpse, Nv, Nq), out_bf16.shape
    assert jnp.allclose(out_bf16, ref, atol=2e-1, rtol=2e-1), \
        float(jnp.max(jnp.abs(out_bf16 - ref)))

    print("KERNEL_OK")
</pallas_src>

<mosaic_0001>
module attributes {stable_mosaic.version = 11 : i64} {
  func.func @_bcnet_kernel(%arg0: i32, %arg1: memref<16x16xf32, #tpu.memory_space<vmem>>, %arg2: memref<64x16xf32, #tpu.memory_space<vmem>>, %arg3: memref<16x96xf32, #tpu.memory_space<vmem>>, %arg4: memref<1x96xf32, #tpu.memory_space<vmem>>, %arg5: memref<16x96xf32, #tpu.memory_space<vmem>>, %arg6: memref<1x96xf32, #tpu.memory_space<vmem>>, %arg7: memref<4x96xf32, #tpu.memory_space<vmem>>, %arg8: memref<1x128xf32, #tpu.memory_space<vmem>>, %arg9: memref<16x128xf32, #tpu.memory_space<vmem>>, %arg10: memref<16x96xf32, #tpu.memory_space<vmem>>, %arg11: memref<2x128x96xf32, #tpu.memory_space<vmem>>) attributes {dimension_semantics = [#tpu.dimension_semantics<parallel>], iteration_bounds = array<i64: 1>, scalar_prefetch = 0 : i64, scratch_operands = 2 : i64, tpu.core_type = #tpu.core_type<tc>, window_params = [{transform_indices = @transform_0, window_bounds = array<i64: 16, 16>}, {transform_indices = @transform_1, window_bounds = array<i64: 64, 16>}, {pipeline_mode = #tpu.pipeline_mode<synchronous>, transform_indices = @transform_2, window_bounds = array<i64: 16, 96>}, {pipeline_mode = #tpu.pipeline_mode<synchronous>, transform_indices = @transform_3, window_bounds = array<i64: 1, 96>}, {pipeline_mode = #tpu.pipeline_mode<synchronous>, transform_indices = @transform_4, window_bounds = array<i64: 16, 96>}, {pipeline_mode = #tpu.pipeline_mode<synchronous>, transform_indices = @transform_5, window_bounds = array<i64: 1, 96>}, {pipeline_mode = #tpu.pipeline_mode<synchronous>, transform_indices = @transform_6, window_bounds = array<i64: 4, 96>}, {pipeline_mode = #tpu.pipeline_mode<synchronous>, transform_indices = @transform_7, window_bounds = array<i64: 1, 128>}, {transform_indices = @transform_8, window_bounds = array<i64: 16, 128>}]} {
    %c0 = arith.constant 0 : index
    %c0_0 = arith.constant 0 : index
    %0 = vector.load %arg1[%c0, %c0_0] : memref<16x16xf32, #tpu.memory_space<vmem>>, vector<16x16xf32>
    %c0_1 = arith.constant 0 : index
    %c0_2 = arith.constant 0 : index
    %1 = vector.load %arg3[%c0_1, %c0_2] : memref<16x96xf32, #tpu.memory_space<vmem>>, vector<16x96xf32>
    %cst = arith.constant dense<0.000000e+00> : vector<16x96xf32>
    %2 = tpu.matmul %0, %1, %cst {dimension_numbers = #tpu.dot_dimension_numbers<[1], [0], [0], [1], [0, 0, 1, 1], [], []>} : vector<16x16xf32>, vector<16x96xf32>, vector<16x96xf32> -> vector<16x96xf32>
    %c0_3 = arith.constant 0 : index
    %c0_4 = arith.constant 0 : index
    %3 = vector.load %arg4[%c0_3, %c0_4] : memref<1x96xf32, #tpu.memory_space<vmem>>, vector<1x96xf32>
    %4 = vector.broadcast %3 : vector<1x96xf32> to vector<16x96xf32>
    %5 = arith.addf %2, %4 : vector<16x96xf32>
    %cst_5 = arith.constant 0.000000e+00 : f32
    %6 = vector.broadcast %cst_5 : f32 to vector<16x96xf32>
    %7 = arith.maximumf %5, %6 : vector<16x96xf32>
    %c0_6 = arith.constant 0 : index
    %c0_7 = arith.constant 0 : index
    %8 = vector.load %arg2[%c0_6, %c0_7] : memref<64x16xf32, #tpu.memory_space<vmem>>, vector<64x16xf32>
    %c0_8 = arith.constant 0 : index
    %c0_9 = arith.constant 0 : index
    %9 = vector.load %arg5[%c0_8, %c0_9] : memref<16x96xf32, #tpu.memory_space<vmem>>, vector<16x96xf32>
    %cst_10 = arith.constant dense<0.000000e+00> : vector<64x96xf32>
    %10 = tpu.matmul %8, %9, %cst_10 {dimension_numbers = #tpu.dot_dimension_numbers<[1], [0], [0], [1], [0, 0, 1, 1], [], []>} : vector<64x16xf32>, vector<16x96xf32>, vector<64x96xf32> -> vector<64x96xf32>
    %c0_11 = arith.constant 0 : index
    %c0_12 = arith.constant 0 : index
    %11 = vector.load %arg6[%c0_11, %c0_12] : memref<1x96xf32, #tpu.memory_space<vmem>>, vector<1x96xf32>
    %12 = vector.broadcast %11 : vector<1x96xf32> to vector<64x96xf32>
    %13 = arith.addf %10, %12 : vector<64x96xf32>
    %cst_13 = arith.constant 0.000000e+00 : f32
    %14 = vector.broadcast %cst_13 : f32 to vector<64x96xf32>
    %15 = arith.maximumf %13, %14 : vector<64x96xf32>
    %c0_14 = arith.constant 0 : index
    %c0_15 = arith.constant 0 : index
    %16 = vector.load %arg10[%c0_14, %c0_15] : memref<16x96xf32, #tpu.memory_space<vmem>>, vector<16x96xf32>
    tpu.vector_store %arg10[%c0_14, %c0_15], %7 {strides = array<i32>} : memref<16x96xf32, #tpu.memory_space<vmem>>, vector<16x96xf32>,
    %c0_16 = arith.constant 0 : index
    %c0_17 = arith.constant 0 : index
    %17 = vector.load %arg7[%c0_16, %c0_17] : memref<4x96xf32, #tpu.memory_space<vmem>>, vector<4x96xf32>
    %18 = vector.shape_cast %17 : vector<4x96xf32> to vector<1x4x1x96xf32>
    %19 = vector.shape_cast %15 : vector<64x96xf32> to vector<2x32x96xf32>
    %20 = vector.shape_cast %19 : vector<2x32x96xf32> to vector<2x1x32x96xf32>
    %21 = vector.broadcast %18 : vector<1x4x1x96xf32> to vector<2x4x32x96xf32>
    %22 = vector.broadcast %20 : vector<2x1x32x96xf32> to vector<2x4x32x96xf32>
    %23 = arith.mulf %21, %22 : vector<2x4x32x96xf32>
    %24 = vector.shape_cast %23 : vector<2x4x32x96xf32> to vector<2x128x96xf32>
    %c0_18 = arith.constant 0 : index
    %c0_19 = arith.constant 0 : index
    %c0_20 = arith.constant 0 : index
    %25 = vector.load %arg11[%c0_18, %c0_19, %c0_20] : memref<2x128x96xf32, #tpu.memory_space<vmem>>, vector<2x128x96xf32>
    tpu.vector_store %arg11[%c0_18, %c0_19, %c0_20], %24 {strides = array<i32>} : memref<2x128x96xf32, #tpu.memory_space<vmem>>, vector<2x128x96xf32>,
    %c0_21 = arith.constant 0 : index
    %c0_22 = arith.constant 0 : index
    %26 = vector.load %arg8[%c0_21, %c0_22] : memref<1x128xf32, #tpu.memory_space<vmem>>, vector<1x128xf32>
    %c0_i32 = arith.constant 0 : i32
    %c8_i32 = arith.constant 8 : i32
    %27 = arith.muli %c0_i32, %c8_i32 : i32
    %28 = tpu.assume_multiple %27, 8 : i32
    %29 = arith.index_cast %28 : i32 to index
    %c0_23 = arith.constant 0 : index
    %30 = vector.load %arg10[%29, %c0_23] : memref<16x96xf32, #tpu.memory_space<vmem>>, vector<8x96xf32>
    %31 = arith.index_cast %c0_i32 : i32 to index
    %c0_24 = arith.constant 0 : index
    %c0_25 = arith.constant 0 : index
    %32 = vector.load %arg11[%31, %c0_24, %c0_25] : memref<2x128x96xf32, #tpu.memory_space<vmem>>, vector<1x128x96xf32>
    %33 = vector.shape_cast %32 : vector<1x128x96xf32> to vector<128x96xf32>
    %cst_26 = arith.constant dense<0.000000e+00> : vector<8x128xf32>
    %34 = tpu.matmul %30, %33, %cst_26 {dimension_numbers = #tpu.dot_dimension_numbers<[1], [1], [0], [0], [0, 0, 1, 0], [], []>} : vector<8x96xf32>, vector<128x96xf32>, vector<8x128xf32> -> vector<8x128xf32>
    %35 = vector.broadcast %26 : vector<1x128xf32> to vector<8x128xf32>
    %36 = arith.addf %34, %35 : vector<8x128xf32>
    %37 = arith.index_cast %28 : i32 to index
    %c0_27 = arith.constant 0 : index
    %38 = vector.load %arg9[%37, %c0_27] : memref<16x128xf32, #tpu.memory_space<vmem>>, vector<8x128xf32>
    tpu.vector_store %arg9[%37, %c0_27], %36 {strides = array<i32>} : memref<16x128xf32, #tpu.memory_space<vmem>>, vector<8x128xf32>,
    %c1_i32 = arith.constant 1 : i32
    %c8_i32_28 = arith.constant 8 : i32
    %39 = arith.muli %c1_i32, %c8_i32_28 : i32
    %40 = tpu.assume_multiple %39, 8 : i32
    %41 = arith.index_cast %40 : i32 to index
    %c0_29 = arith.constant 0 : index
    %42 = vector.load %arg10[%41, %c0_29] : memref<16x96xf32, #tpu.memory_space<vmem>>, vector<8x96xf32>
    %43 = arith.index_cast %c1_i32 : i32 to index
    %c0_30 = arith.constant 0 : index
    %c0_31 = arith.constant 0 : index
    %44 = vector.load %arg11[%43, %c0_30, %c0_31] : memref<2x128x96xf32, #tpu.memory_space<vmem>>, vector<1x128x96xf32>
    %45 = vector.shape_cast %44 : vector<1x128x96xf32> to vector<128x96xf32>
    %cst_32 = arith.constant dense<0.000000e+00> : vector<8x128xf32>
    %46 = tpu.matmul %42, %45, %cst_32 {dimension_numbers = #tpu.dot_dimension_numbers<[1], [1], [0], [0], [0, 0, 1, 0], [], []>} : vector<8x96xf32>, vector<128x96xf32>, vector<8x128xf32> -> vector<8x128xf32>
    %47 = vector.broadcast %26 : vector<1x128xf32> to vector<8x128xf32>
    %48 = arith.addf %46, %47 : vector<8x128xf32>
    %49 = arith.index_cast %40 : i32 to index
    %c0_33 = arith.constant 0 : index
    %50 = vector.load %arg9[%49, %c0_33] : memref<16x128xf32, #tpu.memory_space<vmem>>, vector<8x128xf32>
    tpu.vector_store %arg9[%49, %c0_33], %48 {strides = array<i32>} : memref<16x128xf32, #tpu.memory_space<vmem>>, vector<8x128xf32>,
    %c2_i32 = arith.constant 2 : i32
    return
  }
  func.func @transform_0(%arg0: i32) -> (i32, i32) {
    %c0_i32 = arith.constant 0 : i32
    %c0_i32_0 = arith.constant 0 : i32
    return %arg0, %c0_i32 : i32, i32
  }
  func.func @transform_1(%arg0: i32) -> (i32, i32) {
    %c0_i32 = arith.constant 0 : i32
    %c0_i32_0 = arith.constant 0 : i32
    return %arg0, %c0_i32 : i32, i32
  }
  func.func @transform_2(%arg0: i32) -> (i32, i32) {
    %c0_i32 = arith.constant 0 : i32
    %c0_i32_0 = arith.constant 0 : i32
    %c0_i32_1 = arith.constant 0 : i32
    return %c0_i32, %c0_i32_0 : i32, i32
  }
  func.func @transform_3(%arg0: i32) -> (i32, i32) {
    %c0_i32 = arith.constant 0 : i32
    %c0_i32_0 = arith.constant 0 : i32
    %c0_i32_1 = arith.constant 0 : i32
    return %c0_i32, %c0_i32_0 : i32, i32
  }
  func.func @transform_4(%arg0: i32) -> (i32, i32) {
    %c0_i32 = arith.constant 0 : i32
    %c0_i32_0 = arith.constant 0 : i32
    %c0_i32_1 = arith.constant 0 : i32
    return %c0_i32, %c0_i32_0 : i32, i32
  }
  func.func @transform_5(%arg0: i32) -> (i32, i32) {
    %c0_i32 = arith.constant 0 : i32
    %c0_i32_0 = arith.constant 0 : i32
    %c0_i32_1 = arith.constant 0 : i32
    return %c0_i32, %c0_i32_0 : i32, i32
  }
  func.func @transform_6(%arg0: i32) -> (i32, i32) {
    %c0_i32 = arith.constant 0 : i32
    %c0_i32_0 = arith.constant 0 : i32
    %c0_i32_1 = arith.constant 0 : i32
    return %c0_i32, %c0_i32_0 : i32, i32
  }
  func.func @transform_7(%arg0: i32) -> (i32, i32) {
    %c0_i32 = arith.constant 0 : i32
    %c0_i32_0 = arith.constant 0 : i32
    %c0_i32_1 = arith.constant 0 : i32
    return %c0_i32, %c0_i32_0 : i32, i32
  }
  func.func @transform_8(%arg0: i32) -> (i32, i32) {
    %c0_i32 = arith.constant 0 : i32
    %c0_i32_0 = arith.constant 0 : i32
    return %arg0, %c0_i32 : i32, i32
  }
}

</mosaic_0001>

<bundles_post_ra>
// kernel: tpu_custom_call.1
= control target key start
LH: loop header
LB: loop body
LE: loop exit
PB: predicated region body
PF: predicated region fallthrough
CT: control target
= control target key end

     0   :  { %vm38_vm0 = vcmask 130048   ;;  %s749_s0 = inlined_call_operand.vmem [shape: f32[16,16], index: 0, kind: input, shape index: {}]   ;;  %s750_s1 = inlined_call_operand.vmem [shape: f32[64,16], index: 1, kind: input, shape index: {}]   ;;  %s751_s2 = inlined_call_operand.vmem [shape: f32[16,96], index: 2, kind: input, shape index: {}]   ;;  %s752_s3 = inlined_call_operand.vmem [shape: f32[1,96], index: 3, kind: input, shape index: {}]   ;;  %s753_s4 = inlined_call_operand.vmem [shape: f32[16,96], index: 4, kind: input, shape index: {}]   ;;  %s754_s5 = inlined_call_operand.vmem [shape: f32[1,96], index: 5, kind: input, shape index: {}]   ;;  %s755_s6 = inlined_call_operand.vmem [shape: f32[4,96], index: 6, kind: input, shape index: {}]   ;;  %s756_s7 = inlined_call_operand.vmem [shape: f32[1,128], index: 7, kind: input, shape index: {}]   ;;  %s757_s8 = inlined_call_operand.hbm [shape: f32[16,128], index: 8, kind: output, shape index: {}]  }
   0x1   :  { %v79_v0 = vld [vmem:[%s753_s4 + $0x8] sm:$0xff]  ;;  %v78_v1 = vld [vmem:[%s753_s4] sm:$0xff] }
   0x2   :  { %122 = vmatpush.msra.mxu1 %v79_v0  ;;  %v70_v2 = vld [vmem:[%s750_s1] sm:$0xff] }
   0x4   :  { %123 = vmatpush.msra.mxu1 %v78_v1 }
   0x5   :  { %13 = vsyncpa [#allocation5], 0  ;;  %442 = vmatmul.msk.f32.vlgmr.msra.gmra.mxu1 %vm38_vm0, %v70_v2  ;;  %v71_v3 = vld [vmem:[%s750_s1 + $0x8] sm:$0xff]  ;;  %v72_v4 = vld [vmem:[%s750_s1 + $0x10] sm:$0xff]  ;;  %vm157_vm1 = vcmask 785408   ;;  %s516_s12 = smov [#allocation4]  }
   0x6   :  { %v73_v5 = vld [vmem:[%s750_s1 + $0x18] sm:$0xff]  ;;  %v33_v6 = vld [vmem:[%s751_s2 + $0x8] sm:$0xff]  ;;  %v32_v7 = vld [vmem:[%s751_s2] sm:$0xff]  ;;  %s426_s13 = sshll.u32 %s516_s12, 4  ;;  %s428_s15 = sshll.u32 %s757_s8, 4  ;;  %s427_s13 = int_to_ptr.vmem [resolvable:$true] %s426_s13  ;;  %s429_s15 = int_to_ptr.hbm [resolvable:$true] %s428_s15 }
   0x7   :  { %59 = vmatpush.msra.mxu0 %v33_v6  ;;  %v30_v8 = vld [vmem:[%s749_s0] sm:$0xff]  ;;  %v31_v10 = vld [vmem:[%s749_s0 + $0x8] sm:$0xff]  ;;  %v76_v12 = vld [vmem:[%s750_s1 + $0x30] sm:$0xff]  ;;  %s517_s16 = smov 128   ;;  %s518_s17 = smov 8  }
   0x8   :  { %v74_v9 = vld [vmem:[%s750_s1 + $0x20] sm:$0xff]  ;;  %v75_v11 = vld [vmem:[%s750_s1 + $0x28] sm:$0xff]  ;;  %v77_v13 = vld [vmem:[%s750_s1 + $0x38] sm:$0xff] }
   0x9   :  { %60 = vmatpush.msra.mxu0 %v32_v7  ;;  %v160_v14 = vld [vmem:[%s755_s6] sm:$0xf] }
   0xa   :  { %440 = vmatmul.msk.f32.vlgmr.msra.gmra.mxu0 %vm38_vm0, %v30_v8  ;;  %v622_v15 = vld [vmem:[%s754_s5] ss:$0 sm:$0xff]  ;;  %v162_v16 = vrot.slane %v160_v14, 1  ;;  %v163_v17 = vrot.slane %v160_v14, 2  ;;  %v164_v18 = vrot.slane %v160_v14, 3  ;;  %v625_v21 = vperm.slane %v160_v14, 0 }
   0xc   :  { %v627_v22 = vperm.slane %v162_v16, 0  ;;  %v629_v23 = vperm.slane %v163_v17, 0  ;;  %v631_v24 = vperm.slane %v164_v18, 0 }
   0xd   :  { %443 = vmatmul.msk.f32.gmra.mxu1 %vm38_vm0, %v71_v3 }
  0x12   :  { %441 = vmatmul.msk.f32.gmra.mxu0 %vm38_vm0, %v31_v10 }
  0x15   :  { %444 = vmatmul.msk.f32.gmra.mxu1 %vm38_vm0, %v72_v4 }
  0x1d   :  { %445 = vmatmul.msk.f32.gmra.mxu1 %vm38_vm0, %v73_v5 }
  0x25   :  { %446 = vmatmul.msk.f32.gmra.mxu1 %vm38_vm0, %v74_v9 }
  0x2d   :  { %447 = vmatmul.msk.f32.gmra.mxu1 %vm38_vm0, %v75_v11 }
  0x35   :  { %448 = vmatmul.msk.f32.gmra.mxu1 %vm38_vm0, %v76_v12 }
  0x3d   :  { %449 = vmatmul.msk.f32.gmra.mxu1 %vm38_vm0, %v77_v13 }
  0x82   :  { %v125_v19 = vpop.f32.mrf.mxu1 }
  0x83   :  { %v126_v20 = vadd.f32 %v622_v15, %v125_v19 }
  0x85   :  { %v149_v25 = vmax.f32 %v126_v20, 0.0 }
  0x87   :  { %v173_v26 = vmul.f32 %v625_v21, %v149_v25  ;;  %v177_v27 = vmul.f32 %v627_v22, %v149_v25  ;;  %v181_v28 = vmul.f32 %v629_v23, %v149_v25  ;;  %v185_v29 = vmul.f32 %v631_v24, %v149_v25 }
  0x89   :  { %205 = vst.msk [vmem:[#allocation3] sm:$0xff] %vm157_vm1, %v173_v26 }
  0x8a   :  { %209 = vst.msk [vmem:[#allocation3 + $0x20] sm:$0xff] %vm157_vm1, %v177_v27  ;;  %v128_v30 = vpop.f32.mrf.mxu1 }
  0x8b   :  { %213 = vst.msk [vmem:[#allocation3 + $0x40] sm:$0xff] %vm157_vm1, %v181_v28  ;;  %v129_v31 = vadd.f32 %v622_v15, %v128_v30  ;;  %v62_v30 = vpop.f32.mrf.mxu0 }
  0x8c   :  { %217 = vst.msk [vmem:[#allocation3 + $0x60] sm:$0xff] %vm157_vm1, %v185_v29  ;;  %v488_v29 = vld [vmem:[%s752_s3] ss:$0 sm:$0xff] }
  0x8d   :  { %v150_v32 = vmax.f32 %v129_v31, 0.0  ;;  %v63_v31 = vadd.f32 %v488_v29, %v62_v30 }
  0x8f   :  { %v174_v33 = vmul.f32 %v625_v21, %v150_v32  ;;  %v178_v34 = vmul.f32 %v627_v22, %v150_v32  ;;  %v182_v35 = vmul.f32 %v629_v23, %v150_v32  ;;  %v186_v36 = vmul.f32 %v631_v24, %v150_v32 }
  0x91   :  { %206 = vst.msk [vmem:[#allocation3 + $0x8] sm:$0xff] %vm157_vm1, %v174_v33  ;;  %v243_v32 = vld [vmem:[#allocation3 + $0x20] sm:$0xff] }
  0x92   :  { %210 = vst.msk [vmem:[#allocation3 + $0x28] sm:$0xff] %vm157_vm1, %v178_v34  ;;  %v131_v37 = vpop.f32.mrf.mxu1  ;;  %v68_v34 = vmax.f32 %v63_v31, 0.0 }
  0x93   :  { %214 = vst.msk [vmem:[#allocation3 + $0x48] sm:$0xff] %vm157_vm1, %v182_v35  ;;  %v132_v38 = vadd.f32 %v622_v15, %v131_v37  ;;  %v251_v10 = vld [vmem:[#allocation3 + $0x60] sm:$0xff]  ;;  %v65_v37 = vpop.f32.mrf.mxu0 }
  0x94   :  { %218 = vst.msk [vmem:[#allocation3 + $0x68] sm:$0xff] %vm157_vm1, %v186_v36 }
  0x95   :  { %v151_v39 = vmax.f32 %v132_v38, 0.0  ;;  %158 = vst.msk [vmem:[#allocation2] sm:$0xff] %vm157_vm1, %v68_v34  ;;  %v66_v38 = vadd.f32 %v488_v29, %v65_v37 }
  0x97   :  { %v175_v40 = vmul.f32 %v625_v21, %v151_v39  ;;  %v179_v41 = vmul.f32 %v627_v22, %v151_v39  ;;  %v183_v42 = vmul.f32 %v629_v23, %v151_v39  ;;  %v187_v43 = vmul.f32 %v631_v24, %v151_v39 }
  0x99   :  { %207 = vst.msk [vmem:[#allocation3 + $0x10] sm:$0xff] %vm157_vm1, %v175_v40  ;;  %v244_v27 = vld [vmem:[#allocation3 + $0x28] sm:$0xff] }
  0x9a   :  { %211 = vst.msk [vmem:[#allocation3 + $0x30] sm:$0xff] %vm157_vm1, %v179_v41  ;;  %v134_v44 = vpop.f32.mrf.mxu1  ;;  %v69_v41 = vmax.f32 %v66_v38, 0.0 }
  0x9b   :  { %215 = vst.msk [vmem:[#allocation3 + $0x50] sm:$0xff] %vm157_vm1, %v183_v42  ;;  %v135_v45 = vadd.f32 %v622_v15, %v134_v44  ;;  %v252_v4 = vld [vmem:[#allocation3 + $0x68] sm:$0xff]  ;;  %v239_v44 = vld [vmem:[#allocation3] sm:$0xff] }
  0x9c   :  { %219 = vst.msk [vmem:[#allocation3 + $0x70] sm:$0xff] %vm157_vm1, %v187_v43  ;;  %v240_v42 = vld [vmem:[#allocation3 + $0x8] sm:$0xff] }
  0x9d   :  { %v152_v46 = vmax.f32 %v135_v45, 0.0  ;;  %159 = vst.msk [vmem:[#allocation2 + $0x8] sm:$0xff] %vm157_vm1, %v69_v41 }
  0x9f   :  { %v176_v47 = vmul.f32 %v625_v21, %v152_v46  ;;  %v180_v48 = vmul.f32 %v627_v22, %v152_v46  ;;  %v184_v49 = vmul.f32 %v629_v23, %v152_v46  ;;  %v188_v50 = vmul.f32 %v631_v24, %v152_v46  ;;  %v238_v46 = vld [vmem:[#allocation2] sm:$0xff] }
  0xa0   :  { %v241_v39 = vld [vmem:[#allocation3 + $0x10] sm:$0xff] }
  0xa1   :  { %208 = vst.msk [vmem:[#allocation3 + $0x18] sm:$0xff] %vm157_vm1, %v176_v47 }
  0xa2   :  { %212 = vst.msk [vmem:[#allocation3 + $0x38] sm:$0xff] %vm157_vm1, %v180_v48  ;;  %v137_v51 = vpop.f32.mrf.mxu1  ;;  %v249_v20 = vld [vmem:[#allocation3 + $0x50] sm:$0xff] }
  0xa3   :  { %216 = vst.msk [vmem:[#allocation3 + $0x58] sm:$0xff] %vm157_vm1, %v184_v49  ;;  %v138_v52 = vadd.f32 %v622_v15, %v137_v51  ;;  %v253_v1 = vld [vmem:[#allocation3 + $0x70] sm:$0xff] }
  0xa4   :  { %220 = vst.msk [vmem:[#allocation3 + $0x78] sm:$0xff] %vm157_vm1, %v188_v50 }
  0xa5   :  { %v153_v53 = vmax.f32 %v138_v52, 0.0 }
  0xa7   :  { %v189_v54 = vmul.f32 %v625_v21, %v153_v53  ;;  %v193_v55 = vmul.f32 %v627_v22, %v153_v53  ;;  %v197_v56 = vmul.f32 %v629_v23, %v153_v53  ;;  %v201_v57 = vmul.f32 %v631_v24, %v153_v53 }
  0xa8   :  { %v242_v35 = vld [vmem:[#allocation3 + $0x18] sm:$0xff] }
  0xa9   :  { %221 = vst.msk [vmem:[#allocation3 + $0x80] sm:$0xff] %vm157_vm1, %v189_v54 }
  0xaa   :  { %225 = vst.msk [vmem:[#allocation3 + $0xa0] sm:$0xff] %vm157_vm1, %v193_v55  ;;  %v140_v58 = vpop.f32.mrf.mxu1  ;;  %v250_v13 = vld [vmem:[#allocation3 + $0x58] sm:$0xff] }
  0xab   :  { %229 = vst.msk [vmem:[#allocation3 + $0xc0] sm:$0xff] %vm157_vm1, %v197_v56  ;;  %v254_v59 = vld [vmem:[#allocation3 + $0x78] sm:$0xff]  ;;  %v141_v60 = vadd.f32 %v622_v15, %v140_v58  ;;  %v489_v56 = vld [vmem:[%s756_s7] ss:$0 sm:$0xff] }
  0xac   :  { %233 = vst.msk [vmem:[#allocation3 + $0xe0] sm:$0xff] %vm157_vm1, %v201_v57  ;;  %450 = vmatpush.xpose.msk.msra.mxu2 %vm157_vm1, %v254_v59  ;;  %v331_v55 = vld [vmem:[#allocation2 + $0x8] sm:$0xff] }
  0xad   :  { %v154_v61 = vmax.f32 %v141_v60, 0.0 }
  0xaf   :  { %v190_v62 = vmul.f32 %v625_v21, %v154_v61  ;;  %v194_v63 = vmul.f32 %v627_v22, %v154_v61  ;;  %v198_v0 = vmul.f32 %v629_v23, %v154_v61  ;;  %v202_v2 = vmul.f32 %v631_v24, %v154_v61 }
  0xb0   :  { %451 = vmatpush.xpose.msk.msra.mxu2 %vm157_vm1, %v253_v1  ;;  %v333_v54 = vld [vmem:[#allocation3 + $0x80] sm:$0xff] }
  0xb1   :  { %222 = vst.msk [vmem:[#allocation3 + $0x88] sm:$0xff] %vm157_vm1, %v190_v62  ;;  %v337_v50 = vld [vmem:[#allocation3 + $0xa0] sm:$0xff] }
  0xb2   :  { %226 = vst.msk [vmem:[#allocation3 + $0xa8] sm:$0xff] %vm157_vm1, %v194_v63  ;;  %v143_v3 = vpop.f32.mrf.mxu1  ;;  %v341_v45 = vld [vmem:[#allocation3 + $0xc0] sm:$0xff] }
  0xb3   :  { %230 = vst.msk [vmem:[#allocation3 + $0xc8] sm:$0xff] %vm157_vm1, %v198_v0  ;;  %v144_v5 = vadd.f32 %v622_v15, %v143_v3  ;;  %v345_v33 = vld [vmem:[#allocation3 + $0xe0] sm:$0xff] }
  0xb4   :  { %234 = vst.msk [vmem:[#allocation3 + $0xe8] sm:$0xff] %vm157_vm1, %v202_v2  ;;  %452 = vmatpush.xpose.msk.msra.mxu2 %vm157_vm1, %v252_v4 }
  0xb5   :  { %v155_v6 = vmax.f32 %v144_v5, 0.0 }
  0xb7   :  { %v191_v7 = vmul.f32 %v625_v21, %v155_v6  ;;  %v195_v8 = vmul.f32 %v627_v22, %v155_v6  ;;  %v199_v9 = vmul.f32 %v629_v23, %v155_v6  ;;  %v203_v11 = vmul.f32 %v631_v24, %v155_v6 }
  0xb8   :  { %453 = vmatpush.xpose.msk.msra.mxu2 %vm157_vm1, %v251_v10  ;;  %v334_v53 = vld [vmem:[#allocation3 + $0x88] sm:$0xff] }
  0xb9   :  { %223 = vst.msk [vmem:[#allocation3 + $0x90] sm:$0xff] %vm157_vm1, %v191_v7  ;;  %v338_v49 = vld [vmem:[#allocation3 + $0xa8] sm:$0xff] }
  0xba   :  { %227 = vst.msk [vmem:[#allocation3 + $0xb0] sm:$0xff] %vm157_vm1, %v195_v8  ;;  %v146_v12 = vpop.f32.mrf.mxu1  ;;  %v342_v43 = vld [vmem:[#allocation3 + $0xc8] sm:$0xff] }
  0xbb   :  { %231 = vst.msk [vmem:[#allocation3 + $0xd0] sm:$0xff] %vm157_vm1, %v199_v9  ;;  %v147_v14 = vadd.f32 %v622_v15, %v146_v12  ;;  %v248_v15 = vld [vmem:[#allocation3 + $0x48] sm:$0xff] }
  0xbc   :  { %235 = vst.msk [vmem:[#allocation3 + $0xf0] sm:$0xff] %vm157_vm1, %v203_v11  ;;  %454 = vmatpush.xpose.msk.msra.mxu2 %vm157_vm1, %v250_v13  ;;  %v346_v28 = vld [vmem:[#allocation3 + $0xe8] sm:$0xff] }
  0xbd   :  { %v156_v16 = vmax.f32 %v147_v14, 0.0 }
  0xbf   :  { %v192_v17 = vmul.f32 %v625_v21, %v156_v16  ;;  %v196_v18 = vmul.f32 %v627_v22, %v156_v16  ;;  %v200_v19 = vmul.f32 %v629_v23, %v156_v16  ;;  %v204_v25 = vmul.f32 %v631_v24, %v156_v16  ;;  %v247_v21 = vld [vmem:[#allocation3 + $0x40] sm:$0xff]  ;;  %v246_v22 = vld [vmem:[#allocation3 + $0x38] sm:$0xff]  ;;  %v245_v24 = vld [vmem:[#allocation3 + $0x30] sm:$0xff] }
  0xc0   :  { %455 = vmatpush.xpose.msk.msra.mxu2 %vm157_vm1, %v249_v20  ;;  %v335_v52 = vld [vmem:[#allocation3 + $0x90] sm:$0xff] }
  0xc1   :  { %224 = vst.msk [vmem:[#allocation3 + $0x98] sm:$0xff] %vm157_vm1, %v192_v17  ;;  %v339_v48 = vld [vmem:[#allocation3 + $0xb0] sm:$0xff] }
  0xc2   :  { %228 = vst.msk [vmem:[#allocation3 + $0xb8] sm:$0xff] %vm157_vm1, %v196_v18  ;;  %v343_v40 = vld [vmem:[#allocation3 + $0xd0] sm:$0xff] }
  0xc3   :  { %232 = vst.msk [vmem:[#allocation3 + $0xd8] sm:$0xff] %vm157_vm1, %v200_v19  ;;  %v347_v26 = vld [vmem:[#allocation3 + $0xf0] sm:$0xff] }
  0xc4   :  { %236 = vst.msk [vmem:[#allocation3 + $0xf8] sm:$0xff] %vm157_vm1, %v204_v25  ;;  %456 = vmatpush.xpose.msk.msra.mxu2 %vm157_vm1, %v248_v15 }
  0xc8   :  { %457 = vmatpush.xpose.msk.msra.mxu2 %vm157_vm1, %v247_v21  ;;  %v336_v51 = vld [vmem:[#allocation3 + $0x98] sm:$0xff] }
  0xc9   :  { %v340_v47 = vld [vmem:[#allocation3 + $0xb8] sm:$0xff] }
  0xca   :  { %v344_v36 = vld [vmem:[#allocation3 + $0xd8] sm:$0xff] }
  0xcb   :  { %v348_v23 = vld [vmem:[#allocation3 + $0xf8] sm:$0xff] }
  0xcc   :  { %458 = vmatpush.xpose.msk.msra.mxu2 %vm157_vm1, %v246_v22  ;;  %467 = vmatpush.xpose.msk.msra.mxu3 %vm157_vm1, %v348_v23 }
  0xd0   :  { %459 = vmatpush.xpose.msk.msra.mxu2 %vm157_vm1, %v245_v24  ;;  %468 = vmatpush.xpose.msk.msra.mxu3 %vm157_vm1, %v347_v26 }
  0xd4   :  { %460 = vmatpush.xpose.msk.msra.mxu2 %vm157_vm1, %v244_v27  ;;  %469 = vmatpush.xpose.msk.msra.mxu3 %vm157_vm1, %v346_v28 }
  0xd8   :  { %461 = vmatpush.xpose.msk.msra.mxu2 %vm157_vm1, %v243_v32  ;;  %470 = vmatpush.xpose.msk.msra.mxu3 %vm157_vm1, %v345_v33 }
  0xdc   :  { %462 = vmatpush.xpose.msk.msra.mxu2 %vm157_vm1, %v242_v35  ;;  %471 = vmatpush.xpose.msk.msra.mxu3 %vm157_vm1, %v344_v36 }
  0xe0   :  { %463 = vmatpush.xpose.msk.msra.mxu2 %vm157_vm1, %v241_v39  ;;  %472 = vmatpush.xpose.msk.msra.mxu3 %vm157_vm1, %v343_v40 }
  0xe4   :  { %464 = vmatpush.xpose.msk.msra.mxu2 %vm157_vm1, %v240_v42  ;;  %473 = vmatpush.xpose.msk.msra.mxu3 %vm157_vm1, %v342_v43 }
  0xe8   :  { %465 = vmatpush.xpose.msk.msra.mxu2 %vm157_vm1, %v239_v44  ;;  %474 = vmatpush.xpose.msk.msra.mxu3 %vm157_vm1, %v341_v45 }
  0xeb   :  { %466 = vmatmul.msk.f32.vlgmr.msra.gmra.mxu2 %vm157_vm1, %v238_v46 }
  0xec   :  { %475 = vmatpush.xpose.msk.msra.mxu3 %vm157_vm1, %v340_v47 }
  0xf0   :  { %476 = vmatpush.xpose.msk.msra.mxu3 %vm157_vm1, %v339_v48 }
  0xf4   :  { %477 = vmatpush.xpose.msk.msra.mxu3 %vm157_vm1, %v338_v49 }
  0xf8   :  { %478 = vmatpush.xpose.msk.msra.mxu3 %vm157_vm1, %v337_v50 }
  0xfc   :  { %479 = vmatpush.xpose.msk.msra.mxu3 %vm157_vm1, %v336_v51 }
 0x100   :  { %480 = vmatpush.xpose.msk.msra.mxu3 %vm157_vm1, %v335_v52 }
 0x104   :  { %481 = vmatpush.xpose.msk.msra.mxu3 %vm157_vm1, %v334_v53 }
 0x108   :  { %482 = vmatpush.xpose.msk.msra.mxu3 %vm157_vm1, %v333_v54 }
 0x10b   :  { %483 = vmatmul.msk.f32.vlgmr.msra.gmra.mxu3 %vm157_vm1, %v331_v55 }
 0x16e   :  { %v326_v57 = vpop.f32.mrf.mxu2 }
 0x16f   :  { %v327_v58 = vadd.f32 %v489_v56, %v326_v57 }
 0x171   :  { %329 = vst [vmem:[#allocation4] sm:$0xff] %v327_v58 }
 0x18e   :  { %v417_v59 = vpop.f32.mrf.mxu3 }
 0x18f   :  { %v418_v60 = vadd.f32 %v489_v56, %v417_v59 }
 0x191   :  { %421 = vst [vmem:[#allocation4 + $0x8] sm:$0xff] %v418_v60 }
 0x192   :  { %434 = dma.vmem_to_hbm [thread:$0]  %s427_s13, 256, %s429_s15, [#allocation5], %s517_s16, %s517_s16, %s518_s17  }
 0x193   :  { %514 = dma.done.wait [#allocation5], 256  }
 0x194   :  { %515 = vsyncadd [#allocation5], 4294967040 }
 0x195   :  { %439 = vsyncpa [#allocation5], 1 }

</bundles_post_ra>
